<compile_context>
chip_gen: v5e
topology: v5e:2x2
jax: 0.10.0
libtpu: 0.0.40
codegen_flags: <defaults>
</compile_context>

<pallas_src>
import functools
import math

import numpy as np
import jax
import jax.numpy as jnp
from jax.experimental import pallas as pl
from jax.experimental.pallas import tpu as pltpu


def _phase_trick_kernel(t_ref, out_ref, *, neg_emb):
    # t_ref: (TB, 1) f32 timestep column; out_ref: (TB, dim).
    # out = sin(t * [freqs, freqs] + [0, pi/2]) -> single full-width lane-dense store.
    dim = out_ref.shape[-1]
    half = dim // 2
    lane = jax.lax.broadcasted_iota(jnp.int32, (1, dim), 1)
    is_sin = lane < half
    j = jnp.where(is_sin, lane, lane - half).astype(jnp.float32)
    scale = jnp.exp(j * neg_emb)                                  # [freqs, freqs]
    phase = jnp.where(is_sin, 0.0, 0.5 * math.pi).astype(jnp.float32)
    arg = t_ref[...] * scale + phase                              # (TB, dim)
    out_ref[...] = jnp.sin(arg).astype(out_ref.dtype)


def _half_split_kernel(t_ref, out_ref, *, neg_emb):
    # Used when dim//2 is a multiple of 128: half-width argument, two lane-aligned
    # half-stores (no full-width broadcast FMA).
    dim = out_ref.shape[-1]
    half = dim // 2
    j = jax.lax.broadcasted_iota(jnp.int32, (1, half), 1).astype(jnp.float32)
    freqs = jnp.exp(j * neg_emb)                                  # (1, half)
    arg = t_ref[...] * freqs                                      # (TB, half)
    out_ref[:, :half] = jnp.sin(arg).astype(out_ref.dtype)
    out_ref[:, half:] = jnp.cos(arg).astype(out_ref.dtype)


def sinusoidal_position_embeddings(time: jax.Array, dim: int, *,
                                   out_dtype=jnp.float32,
                                   vmem_budget_bytes: int = 12 * 1024 * 1024
                                   ) -> jax.Array:
    """time: (B,) array of timesteps. Returns (B, dim) sinusoidal embeddings."""
    assert dim % 2 == 0 and dim // 2 > 1, "dim must be even and > 2"
    half = dim // 2
    B = int(time.shape[0])
    neg_emb = -(math.log(10000.0) / (half - 1))

    out_itemsize = jnp.dtype(out_dtype).itemsize
    align = 16  # bf16-safe sublane multiple (also covers f32's 8)

    # Per-grid-step, double-buffered VMEM bytes per batch row:
    #   output block: dim * itemsize      (x2 buffers)
    #   time block:   (TB, 1) is lane-padded to 128 lanes -> 128 * 4 B (x2 buffers)
    # Budget kept well under v7x's 32 MiB scoped-VMEM default.
    per_row = 2 * (dim * out_itemsize + 128 * 4)
    tb_budget = max(align, (vmem_budget_bytes // per_row) // align * align)
    # Cap at ceil(B/2) (rounded up to align) so the parallel grid has >= 2 steps
    # and both v7x TensorCores get work; big B still amortizes the ~0.35 us/step.
    tb_two_steps = max(align, (((B + 1) // 2) + align - 1) // align * align)
    TB = int(min(tb_budget, tb_two_steps))

    num_blocks = pl.cdiv(B, TB)

    kernel = _half_split_kernel if (half % 128 == 0) else _phase_trick_kernel
    kernel = functools.partial(kernel, neg_emb=neg_emb)

    t2d = time.astype(jnp.float32).reshape(B, 1)

    cost = pl.CostEstimate(flops=2 * B * dim,
                           transcendentals=B * dim,
                           bytes_accessed=B * 4 + B * dim * out_itemsize)

    return pl.pallas_call(
        kernel,
        out_shape=jax.ShapeDtypeStruct((B, dim), out_dtype),
        grid=(num_blocks,),
        in_specs=[pl.BlockSpec((TB, 1), lambda i: (i, 0))],      # timesteps
        out_specs=pl.BlockSpec((TB, dim), lambda i: (i, 0)),
        compiler_params=pltpu.CompilerParams(
            dimension_semantics=("parallel",)),
        cost_estimate=cost,
    )(t2d)


def _reference_np(time: np.ndarray, dim: int) -> np.ndarray:
    """float64 numpy reference of the exact PyTorch formula."""
    half = dim // 2
    emb = math.log(10000.0) / (half - 1)
    freqs = np.exp(np.arange(half, dtype=np.float64) * -emb)
    args = time.astype(np.float64)[:, None] * freqs[None, :]
    return np.concatenate([np.sin(args), np.cos(args)], axis=-1)


def _check(time, dim):
    out = jax.block_until_ready(sinusoidal_position_embeddings(time, dim))
    assert out.shape == (time.shape[0], dim), out.shape
    ref = _reference_np(np.asarray(time), dim)
    # Arguments reach ~1e3, so f32 argument rounding alone gives |err| ~1e-4 in
    # sin/cos; 2e-3 tolerates TPU transcendental approximations while any semantic
    # error (wrong freqs / ordering) would be O(1).
    max_err = float(np.max(np.abs(np.asarray(out, dtype=np.float64) - ref)))
    assert max_err < 2e-3, f"max abs error {max_err} vs reference (dim={dim})"


if __name__ == "__main__":
    key = jax.random.PRNGKey(0)
    k1, k2 = jax.random.split(key)

    # Primary: dim=128 -> phase-trick full-width kernel; B=64 -> 2 parallel grid steps.
    t1 = jax.random.randint(k1, (64,), 0, 1000).astype(jnp.float32)
    _check(t1, 128)

    # Secondary: dim=256 -> half-width lane-aligned split-store kernel;
    # B=40 exercises the masked partial last block (no host-side pad/slice).
    t2 = jax.random.randint(k2, (40,), 0, 1000).astype(jnp.float32)
    _check(t2, 256)

    print("KERNEL_OK")
</pallas_src>

<mosaic_0001>
module attributes {stable_mosaic.version = 11 : i64} {
  func.func @_phase_trick_kernel(%arg0: i32, %arg1: memref<32x1xf32, #tpu.memory_space<vmem>>, %arg2: memref<32x128xf32, #tpu.memory_space<vmem>>) attributes {dimension_semantics = [#tpu.dimension_semantics<parallel>], iteration_bounds = array<i64: 2>, scalar_prefetch = 0 : i64, scratch_operands = 0 : i64, tpu.core_type = #tpu.core_type<tc>, window_params = [{transform_indices = @transform_0, window_bounds = array<i64: 32, 1>}, {transform_indices = @transform_1, window_bounds = array<i64: 32, 128>}]} {
    %0 = tpu.iota {dimensions = array<i32: 1>} : vector<1x128xi32>
    %c64_i32 = arith.constant 64 : i32
    %1 = vector.broadcast %c64_i32 : i32 to vector<1x128xi32>
    %2 = arith.cmpi slt, %0, %1 : vector<1x128xi32>
    %c64_i32_0 = arith.constant 64 : i32
    %3 = vector.broadcast %c64_i32_0 : i32 to vector<1x128xi32>
    %4 = arith.subi %0, %3 : vector<1x128xi32>
    %5 = arith.select %2, %0, %4 : vector<1x128xi1>, vector<1x128xi32>
    %6 = arith.sitofp %5 : vector<1x128xi32> to vector<1x128xf32>
    %cst = arith.constant -0.146195874 : f32
    %7 = vector.broadcast %cst : f32 to vector<1x128xf32>
    %8 = arith.mulf %6, %7 : vector<1x128xf32>
    %9 = math.exp %8 : vector<1x128xf32>
    %cst_1 = arith.constant 0.000000e+00 : f32
    %cst_2 = arith.constant 1.57079637 : f32
    %10 = vector.broadcast %cst_1 : f32 to vector<1x128xf32>
    %11 = vector.broadcast %cst_2 : f32 to vector<1x128xf32>
    %12 = arith.select %2, %10, %11 : vector<1x128xi1>, vector<1x128xf32>
    %c0 = arith.constant 0 : index
    %c0_3 = arith.constant 0 : index
    %13 = vector.load %arg1[%c0, %c0_3] : memref<32x1xf32, #tpu.memory_space<vmem>>, vector<32x1xf32>
    %14 = vector.broadcast %13 : vector<32x1xf32> to vector<32x128xf32>
    %15 = vector.broadcast %9 : vector<1x128xf32> to vector<32x128xf32>
    %16 = arith.mulf %14, %15 : vector<32x128xf32>
    %17 = vector.broadcast %12 : vector<1x128xf32> to vector<32x128xf32>
    %18 = arith.addf %16, %17 : vector<32x128xf32>
    %19 = math.sin %18 : vector<32x128xf32>
    %c0_4 = arith.constant 0 : index
    %c0_5 = arith.constant 0 : index
    %20 = vector.load %arg2[%c0_4, %c0_5] : memref<32x128xf32, #tpu.memory_space<vmem>>, vector<32x128xf32>
    tpu.vector_store %arg2[%c0_4, %c0_5], %19 {strides = array<i32>} : memref<32x128xf32, #tpu.memory_space<vmem>>, vector<32x128xf32>,
    return
  }
  func.func @transform_0(%arg0: i32) -> (i32, i32) {
    %c0_i32 = arith.constant 0 : i32
    %c0_i32_0 = arith.constant 0 : i32
    return %arg0, %c0_i32 : i32, i32
  }
  func.func @transform_1(%arg0: i32) -> (i32, i32) {
    %c0_i32 = arith.constant 0 : i32
    %c0_i32_0 = arith.constant 0 : i32
    return %arg0, %c0_i32 : i32, i32
  }
}

</mosaic_0001>

<bundles_post_ra>
// kernel: tpu_custom_call.1
= control target key start
LH: loop header
LB: loop body
LE: loop exit
PB: predicated region body
PF: predicated region fallthrough
CT: control target
= control target key end

     0   :  { %6 = vsyncpa [#allocation3], 0  ;;  %s1554_s0 = inlined_call_operand.vmem [shape: f32[64,1], index: 0, kind: input, shape index: {}]   ;;  %s1555_s1 = inlined_call_operand.hbm [shape: f32[64,128], index: 1, kind: output, shape index: {}]  }
   0x1   :  { %8 = vsyncpa [#allocation3 + $0x1], 0  ;;  %s1025_s6 = smov 0   ;;  %s1027_s7 = smov 0  }
   0x2   :  { %s1029_s8 = smov 0   ;;  %s1031_s9 = smov 0  }
   0x3 LB: > { %s1046_s10 = sadd.s32 4294967295, %s1003_s9   ;;  %s862_s11 = sadd.s32 4294967294, %s1003_s9   ;;  %s1003_s9 = sphi %s1031_s9, %s1567_s9   ;;  %s999_s8 = sphi %s1029_s8, %s1566_s8   ;;  %s995_s7 = sphi %s1027_s7, %s1565_s7   ;;  %s991_s6 = sphi %s1025_s6, %s1564_s6  }
   0x4   : > { %s1050_s12 = sadd.s32 1, %s1003_s9   ;;  %s47_s13 = sadd.s32 1, %s999_s8 }
   0x5   : > { %s44_s14 = ssub.s32 %s1003_s9, %s1050_s12  ;;  %p57_p0 = scmp.ne.s32.totalorder %s999_s8, %s995_s7 }
   0x6   : > { %p45_p1 = scmp.eq.s32.totalorder %s44_s14, 0  ;;  %p58_p2 = scmp.eq.s32.totalorder %s1046_s10, 1 }
   0x7   : > { %p63_p3 = scmp.ne.s32.totalorder %s995_s7, %s991_s6  ;;  %p64_p4 = scmp.eq.s32.totalorder %s862_s11, 1 }
   0x8   : > { %s1061_s15 = scalar_select %p45_p1, %s999_s8, %s47_s13  }
   0x9   : > { %p1063_p5 = por %p58_p2, %p57_p0  ;;  %p1067_p6 = por %p64_p4, %p63_p3 }
   0xa   : > { %p865_p7 = scmp.ge.s32.totalorder %s1003_s9, 1  ;;  %p91_p8 = scmp.lt.s32.totalorder %s1003_s9, 3 }
   0xc   : > { %p92_p9 = pnand %p865_p7, %p91_p8 }
   0xd   : > { %s867_s18 = sshll.u32 (!%p92_p9), %s1046_s10, 2  ;;  %s108_s23 = sand.u32 (!%p92_p9), 1, %s995_s7  }
   0xe   : > { %95 = sbr.rel (%p92_p9) target bundleno = 339 (0x153), region = 24  ;;  %p112_p10 = scmp.lt.s32.totalorder (!%p92_p9), %s867_s18, 7 }
   0xf   : > { %s866_s24 = sshll.u32 (!%p92_p9), %s108_s23, 5  ;;  %s887_s26 = sshll.u32 (!%p92_p9), %s1046_s10, 5 }
  0x10   : > { %s1404_s25 = scalar_lea.vmem (!%p92_p9), [#allocation2], %s866_s24  ;;  %s796_s29 = scalar_lea.hbm (!%p92_p9), %s1555_s1, %s887_s26 }
  0x11   : > { %s797_s30 = sshll.u32 (!%p92_p9), %s1404_s25, 4  ;;  %s799_s2 = sshll.u32 (!%p92_p9), %s796_s29, 4  ;;  %s798_s30 = int_to_ptr.vmem [resolvable:$true] %s797_s30  ;;  %s800_s2 = int_to_ptr.hbm [resolvable:$true] %s799_s2 }
  0x12   : > { %s785_s3 = scalar_lea.sflag (!%p92_p9), [#allocation3], %s108_s23  ;;  %s955_s4 = sshra.s32 (!%p92_p9), %s800_s2, 4  ;;  %s956_s4 = int_to_ptr.hbm [resolvable:$true] %s955_s4 }
  0x13   : > { %v1005_v0 = vmov 0   ;;  %s1569_s18 = smov (!%p112_p10, %s867_s18), 7  ;;  %v118_v5 = vlaneseq  ;;  %v1006_v13 = vmov 1.5707964   ;;  %v1007_v48 = vmov 683565275   ;;  %p962_p0 = scmp.lt.s32.totalorder %s956_s4, %s1555_s1 }
  0x14   : > { %938 = vset.pattern.permute.xlu1 %v1005_v0  ;;  %937 = vset.pattern.permute.xlu0 %v1005_v0  ;;  %s868_s19 = sshll.u32 %s1569_s18, 3  ;;  %v1008_v50 = vmov 2475754826   ;;  %v1009_v54 = vmov 2131351028   ;;  %s957_s5 = scalar_lea.hbm %s956_s4, 32 }
  0x15   : > { %s115_s22 = scalar_lea.vmem %s1554_s0, %s868_s19  ;;  %v119_v6 = vand.u32 127, %v118_v5  ;;  %v1010_v57 = vmov 2102212464   ;;  %v1011_v60 = vmov 920167782   ;;  %p958_p11 = scmp.ne.s32.totalorder %s956_s4, %s957_s5 }
  0x16   : > { %v130_v1 = vld [vmem:[%s115_s22 + $0x10] sm:$0xff]  ;;  %v128_v2 = vld [vmem:[%s115_s22] sm:$0xff]  ;;  %v131_v3 = vld [vmem:[%s115_s22 + $0x18] sm:$0xff]  ;;  %v1012_v63 = vmov 1326507024   ;;  %s961_s13 = scalar_lea.hbm %s1555_s1, 64 }
  0x17   : > { %144 = vperm.xlu1 %938, %v130_v1   ;;  %134 = vperm.xlu0 %937, %v128_v2   ;;  %v129_v4 = vld [vmem:[%s115_s22 + $0x8] sm:$0xff]  ;;  %v869_v7 = vadd.s32 4294967232, %v119_v6  ;;  %vm120_vm0 = vcmp.lt.s32.totalorder %v119_v6, 64  ;;  %p959_p12 = pnand %p958_p11, %p1063_p5  ;;  %p963_p1 = scmp.lt.s32.totalorder %s961_s13, %s957_s5 }
  0x18   : > { %v1081_v14 = vsel %vm120_vm0, 0.0, %v1006_v13 }
  0x19   : > { %v122_v8 = vsel %vm120_vm0, %v119_v6, %v869_v7  ;;  %p960_p13 = pneg %p959_p12  ;;  %p964_p2 = por %p963_p1, %p962_p0 }
  0x1a   : > { %v123_v9 = vcvt.s32.f32 %v122_v8 }
  0x1b   : > { %p965_p3 = pnand %p964_p2, %p960_p13 }
  0x1c   : > { %v124_v10 = vmul.f32 -0.14619587, %v123_v9 }
  0x1e   : > { %v125_v11 = vmul.f32 1.442695, %v124_v10 }
  0x1f   : > { %149 = vperm.xlu1 %938, %v131_v3   ;;  %139 = vperm.xlu0 %937, %v129_v4  }
  0x20   : > { %939 = vpow2.f32 %v125_v11 }
  0x26   : > { %v1079_v12 = vpop.eup %939 }
  0x89   : > { %v145_v15 = vpop.permute.xlu1 %144  ;;  %v135_v16 = vpop.permute.xlu0 %134 }
  0x8a   : > { %v154_v17 = vmul.f32 %v1079_v12, %v145_v15  ;;  %v152_v18 = vmul.f32 %v1079_v12, %v135_v16 }
  0x8c   : > { %v1086_v19 = vadd.f32 %v154_v17, %v1081_v14  ;;  %v1089_v20 = vadd.f32 %v152_v18, %v1081_v14 }
  0x8e   : > { %v470_v21 = vand.u32 2147483647, %v1086_v19  ;;  %v473_v22 = vand.u32 2139095040, %v1086_v19  ;;  %v160_v23 = vand.u32 2147483647, %v1089_v20  ;;  %v163_v24 = vand.u32 2139095040, %v1089_v20 }
  0x90   : > { %v474_v25 = vshrl.u32 %v473_v22, 23  ;;  %v477_v26 = vand.u32 8388607, %v470_v21  ;;  %v164_v27 = vshrl.u32 %v163_v24, 23  ;;  %v167_v28 = vand.u32 8388607, %v160_v23 }
  0x91   : > { %v150_v31 = vpop.permute.xlu1 %149 }
  0x92   : > { %v876_v29 = vadd.s32 4294967169, %v474_v25  ;;  %v478_v30 = vor.u32 8388608, %v477_v26  ;;  %v870_v32 = vadd.s32 4294967169, %v164_v27  ;;  %v168_v33 = vor.u32 8388608, %v167_v28 }
  0x93   : > { %v155_v36 = vmul.f32 %v1079_v12, %v150_v31 }
  0x94   : > { %v480_v34 = vadd.s32 1, %v876_v29  ;;  %v170_v35 = vadd.s32 1, %v870_v32  ;;  %v1100_v37 = vshll.u32 %v478_v30, 8  ;;  %v1102_v39 = vshll.u32 %v168_v33, 8 }
  0x95   : > { %v1105_v42 = vadd.f32 %v155_v36, %v1081_v14 }
  0x96   : > { %vm481_vm1 = vcmp.gt.s32.totalorder %v480_v34, 0  ;;  %vm171_vm2 = vcmp.gt.s32.totalorder %v170_v35, 0  ;;  %v1108_v44 = vand.u32 65535, %v1100_v37  ;;  %v1111_v45 = vshrl.u32 %v1100_v37, 16 }
  0x97   : > { %v482_v38 = vsel %vm481_vm1, %v480_v34, 0  ;;  %v172_v41 = vsel %vm171_vm2, %v170_v35, 0  ;;  %v1120_v52 = vand.u32 65535, %v1102_v39  ;;  %vm472_vm1 = vcmp.lt.s32.totalorder %v1086_v19, 0 }
  0x98   : > { %v484_v40 = vand.u32 31, %v482_v38  ;;  %v1113_v46 = vand.u32 31, %v172_v41  ;;  %v1115_v47 = vshrl.u32 %v482_v38, 5  ;;  %v1162_v34 = vshrl.u32 %v172_v41, 5 }
  0x9a   : > { %v485_v43 = vsub.s32 32, %v484_v40  ;;  %v487_v49 = vshll.u32 %v1007_v48, %v484_v40  ;;  %v490_v51 = vshll.u32 %v1008_v50, %v484_v40  ;;  %v493_v56 = vshll.u32 %v1009_v54, %v484_v40 }
  0x9b   : > { %v496_v59 = vshll.u32 %v1010_v57, %v484_v40  ;;  %v499_v62 = vshll.u32 %v1011_v60, %v484_v40  ;;  %v1131_v5 = vsub.s32 32, %v1113_v46  ;;  %vm502_vm3 = vcmp.lt.s32.totalorder %v1115_v47, 1 }
  0x9c   : > { %v488_v53 = vshrl.u32 %v1008_v50, %v485_v43  ;;  %v491_v55 = vshrl.u32 %v1009_v54, %v485_v43  ;;  %v494_v58 = vshrl.u32 %v1010_v57, %v485_v43  ;;  %v497_v61 = vshrl.u32 %v1011_v60, %v485_v43 }
  0x9d   : > { %v500_v1 = vshrl.u32 %v1012_v63, %v485_v43  ;;  %vm503_vm4 = vcmp.lt.s32.totalorder %v1115_v47, 2  ;;  %v486_v8 = vshrl.u32 %v1007_v48, %v485_v43  ;;  %vm505_vm5 = vcmp.lt.s32.totalorder %v1115_v47, 4 }
  0x9e   : > { %v489_v2 = vor.u32 %v488_v53, %v487_v49  ;;  %v492_v3 = vor.u32 %v491_v55, %v490_v51  ;;  %v495_v4 = vor.u32 %v494_v58, %v493_v56  ;;  %v498_v6 = vor.u32 %v497_v61, %v496_v59 }
  0x9f   : > { %v501_v7 = vor.u32 %v500_v1, %v499_v62  ;;  %vm504_vm6 = vcmp.lt.s32.totalorder %v1115_v47, 3  ;;  %v177_v15 = vshll.u32 %v1007_v48, %v1113_v46  ;;  %v178_v22 = vshrl.u32 %v1008_v50, %v1131_v5 }
  0xa0   : > { %v510_v9 = vsel %vm502_vm3, %v489_v2, %v492_v3  ;;  %v514_v10 = vsel %vm502_vm3, %v492_v3, %v495_v4  ;;  %v511_v11 = vsel %vm505_vm5, %v498_v6, 920167782  ;;  %v507_v16 = vsel %vm505_vm5, %v495_v4, 2102212464 }
  0xa1   : > { %v515_v13 = vsel %vm505_vm5, %v501_v7, 1326507024  ;;  %v512_v17 = vsel %vm504_vm6, %v495_v4, %v511_v11  ;;  %v180_v26 = vshll.u32 %v1008_v50, %v1113_v46  ;;  %v181_v27 = vshrl.u32 %v1009_v54, %v1131_v5 }
  0xa2   : > { %v516_v18 = vsel %vm504_vm6, %v498_v6, %v515_v13  ;;  %v513_v24 = vsel %vm503_vm4, %v510_v9, %v512_v17  ;;  %v506_v32 = vsel %vm502_vm3, %v486_v8, %v489_v2  ;;  %v508_v33 = vsel %vm504_vm6, %v492_v3, %v507_v16 }
  0xa3   : > { %v517_v25 = vsel %vm503_vm4, %v514_v10, %v516_v18  ;;  %v543_v30 = vand.u32 65535, %v513_v24  ;;  %v544_v31 = vshrl.u32 %v513_v24, 16  ;;  %v1164_v35 = vor.u32 %v178_v22, %v177_v15 }
  0xa4   : > { %v521_v28 = vand.u32 65535, %v517_v25  ;;  %v522_v29 = vshrl.u32 %v517_v25, 16  ;;  %v1168_v40 = vor.u32 %v181_v27, %v180_v26  ;;  %v184_v43 = vshrl.u32 %v1010_v57, %v1131_v5 }
  0xa5   : > { %v546_v51 = vmul.u32 %v544_v31, %v1108_v44  ;;  %v547_v53 = vmul.u32 %v543_v30, %v1111_v45  ;;  %v183_v41 = vshll.u32 %v1009_v54, %v1113_v46  ;;  %v545_v58 = vmul.u32 %v543_v30, %v1108_v44 }
  0xa6   : > { %v524_v36 = vmul.u32 %v522_v29, %v1108_v44  ;;  %v525_v38 = vmul.u32 %v521_v28, %v1111_v45  ;;  %v523_v49 = vmul.u32 %v521_v28, %v1108_v44  ;;  %v526_v55 = vmul.u32 %v522_v29, %v1111_v45 }
  0xa7   : > { %v548_v59 = vmul.u32 %v544_v31, %v1111_v45  ;;  %v549_v2 = vshll.u32 %v546_v51, 16  ;;  %v551_v4 = vshll.u32 %v547_v53, 16  ;;  %v185_v6 = vor.u32 %v184_v43, %v183_v41 }
  0xa8   : > { %v527_v56 = vshll.u32 %v524_v36, 16  ;;  %v528_v61 = vshrl.u32 %v524_v36, 16  ;;  %v529_v62 = vshll.u32 %v525_v38, 16  ;;  %v530_v1 = vshrl.u32 %v525_v38, 16 }
  0xa9   : > { %vm553_vm8 = vc.u32 %v545_v58, %v549_v2  ;;  %v555_v8 = vadd.s32 %v549_v2, %v545_v58  ;;  %v187_v9 = vshrl.u32 %v1011_v60, %v1131_v5  ;;  %v186_v45 = vshll.u32 %v1010_v57, %v1113_v46 }
  0xaa   : > { %vm531_vm7 = vc.u32 %v523_v49, %v527_v56  ;;  %v533_v3 = vadd.s32 %v527_v56, %v523_v49  ;;  %v554_v44 = vsel %vm553_vm8, 1, %v1005_v0  ;;  %v189_v15 = vshll.u32 %v1011_v60, %v1113_v46 }
  0xab   : > { %v532_v7 = vsel %vm531_vm7, 1, %v1005_v0  ;;  %v556_v13 = vadd.s32 %v554_v44, %v548_v59  ;;  %vm557_vm10 = vc.u32 %v555_v8, %v551_v4  ;;  %v188_v18 = vor.u32 %v187_v9, %v186_v45 }
  0xac   : > { %v534_v10 = vadd.s32 %v532_v7, %v526_v55  ;;  %vm535_vm9 = vc.u32 %v533_v3, %v529_v62  ;;  %v558_v17 = vsel %vm557_vm10, 1, %v1005_v0  ;;  %v190_v22 = vshrl.u32 %v1012_v63, %v1131_v5 }
  0xad   : > { %v536_v11 = vsel %vm535_vm9, 1, %v1005_v0  ;;  %v550_v24 = vshrl.u32 %v546_v51, 16  ;;  %v552_v25 = vshrl.u32 %v547_v53, 16  ;;  %v1192_v26 = vadd.s32 %v555_v8, %v551_v4 }
  0xae   : > { %v538_v16 = vadd.s32 %v536_v11, %v534_v10  ;;  %v560_v27 = vadd.s32 %v558_v17, %v556_v13  ;;  %v191_v29 = vor.u32 %v190_v22, %v189_v15  ;;  %vm192_vm11 = vcmp.lt.s32.totalorder %v1162_v34, 1 }
  0xaf   : > { %vm195_vm12 = vcmp.lt.s32.totalorder %v1162_v34, 4  ;;  %vm194_vm13 = vcmp.lt.s32.totalorder %v1162_v34, 3  ;;  %v200_v46 = vsel %vm192_vm11, %v1164_v35, %v1168_v40  ;;  %vm193_vm14 = vcmp.lt.s32.totalorder %v1162_v34, 2 }
  0xb0   : > { %v539_v28 = vadd.s32 %v538_v16, %v528_v61  ;;  %v561_v30 = vadd.s32 %v560_v27, %v550_v24  ;;  %v201_v31 = vsel %vm195_vm12, %v188_v18, 920167782  ;;  %v204_v43 = vsel %vm192_vm11, %v1168_v40, %v185_v6 }
  0xb1   : > { %v202_v38 = vsel %vm194_vm13, %v185_v6, %v201_v31  ;;  %v509_v49 = vsel %vm503_vm4, %v506_v32, %v508_v33  ;;  %v205_v41 = vsel %vm195_vm12, %v191_v29, 1326507024  ;;  %v210_v56 = vshrl.u32 %v1102_v39, 16 }
  0xb2   : > { %v1203_v36 = vadd.s32 %v539_v28, %v530_v1  ;;  %v562_v51 = vadd.s32 %v561_v30, %v552_v25  ;;  %v203_v53 = vsel %vm193_vm14, %v200_v46, %v202_v38  ;;  %v206_v55 = vsel %vm194_vm13, %v188_v18, %v205_v41 }
  0xb3   : > { %v233_v58 = vand.u32 65535, %v203_v53  ;;  %v207_v47 = vsel %vm193_vm14, %v204_v43, %v206_v55  ;;  %v234_v32 = vshrl.u32 %v203_v53, 16  ;;  %v628_v33 = vand.u32 2139095040, %v1105_v42 }
  0xb4   : > { %vm565_vm15 = vc.u32 %v1203_v36, %v1192_v26  ;;  %v566_v59 = vadd.s32 1, %v562_v51  ;;  %v563_v61 = vmul.u32 %v1100_v37, %v509_v49  ;;  %v211_v62 = vand.u32 65535, %v207_v47 }
  0xb5   : > { %v212_v1 = vshrl.u32 %v207_v47, 16  ;;  %v176_v3 = vshrl.u32 %v1007_v48, %v1131_v5  ;;  %v236_v4 = vmul.u32 %v234_v32, %v1120_v52  ;;  %v237_v7 = vmul.u32 %v233_v58, %v210_v56 }
  0xb6   : > { %v567_v2 = vsel %vm565_vm15, %v566_v59, %v562_v51  ;;  %v197_v9 = vsel %vm195_vm12, %v185_v6, 2102212464  ;;  %v215_v44 = vmul.u32 %v211_v62, %v210_v56  ;;  %v235_v45 = vmul.u32 %v233_v58, %v1120_v52 }
  0xb7   : > { %v568_v8 = vadd.s32 %v567_v2, %v563_v61  ;;  %v214_v10 = vmul.u32 %v212_v1, %v1120_v52  ;;  %v238_v11 = vmul.u32 %v234_v32, %v210_v56  ;;  %v239_v37 = vshll.u32 %v236_v4, 16 }
  0xb8   : > { %v629_v13 = vshrl.u32 %v628_v33, 23  ;;  %v213_v16 = vmul.u32 %v211_v62, %v1120_v52  ;;  %v216_v17 = vmul.u32 %v212_v1, %v210_v56  ;;  %v219_v18 = vshll.u32 %v215_v44, 16 }
  0xb9   : > { %v569_v15 = vadd.s32 536870912, %v568_v8  ;;  %v217_v5 = vshll.u32 %v214_v10, 16  ;;  %v241_v22 = vshll.u32 %v237_v7, 16  ;;  %vm243_vm0 = vc.u32 %v235_v45, %v239_v37 }
  0xba   : > { %v245_v24 = vadd.s32 %v239_v37, %v235_v45  ;;  %v244_v27 = vsel %vm243_vm0, 1, %v1005_v0  ;;  %v196_v28 = vsel %vm192_vm11, %v176_v3, %v1164_v35  ;;  %v198_v46 = vsel %vm194_vm13, %v1168_v40, %v197_v9 }
  0xbb   : > { %v570_v6 = vshrl.u32 %v569_v15, 30  ;;  %vm221_vm2 = vc.u32 %v213_v16, %v217_v5  ;;  %v223_v25 = vadd.s32 %v217_v5, %v213_v16  ;;  %v246_v52 = vadd.s32 %v244_v27, %v238_v11 }
  0xbc   : > { %v222_v29 = vsel %vm221_vm2, 1, %v1005_v0  ;;  %vm247_vm3 = vc.u32 %v245_v24, %v241_v22  ;;  %v625_v49 = vand.u32 2147483647, %v1105_v42  ;;  %v879_v51 = vadd.s32 4294967169, %v629_v13 }
  0xbd   : > { %v571_v30 = vshll.u32 %v570_v6, 30  ;;  %v224_v31 = vadd.s32 %v222_v29, %v216_v17  ;;  %vm225_vm4 = vc.u32 %v223_v25, %v219_v18  ;;  %v248_v43 = vsel %vm247_vm3, 1, %v1005_v0 }
  0xbe   : > { %v226_v38 = vsel %vm225_vm4, 1, %v1005_v0  ;;  %v218_v35 = vshrl.u32 %v214_v10, 16  ;;  %v250_v55 = vadd.s32 %v248_v43, %v246_v52  ;;  %v594_v56 = vsub.s32 4, %v570_v6 }
  0xbf   : > { %v572_v53 = vsub.s32 %v568_v8, %v571_v30  ;;  %v228_v41 = vadd.s32 %v226_v38, %v224_v31  ;;  %v199_v58 = vsel %vm193_vm14, %v196_v28, %v198_v46  ;;  %v240_v59 = vshrl.u32 %v236_v4, 16 }
  0xc0   : > { %v635_v47 = vadd.s32 1, %v879_v51  ;;  %v220_v32 = vshrl.u32 %v215_v44, 16  ;;  %v242_v61 = vshrl.u32 %v237_v7, 16  ;;  %v1248_v62 = vadd.s32 %v245_v24, %v241_v22 }
  0xc1   : > { %vm573_vm5 = vcmp.lt.s32.totalorder %v572_v53, 0  ;;  %v574_v40 = vsub.s32 0, %v572_v53  ;;  %v229_v33 = vadd.s32 %v228_v41, %v218_v35  ;;  %v251_v1 = vadd.s32 %v250_v55, %v240_v59 }
  0xc2   : > { %vm636_vm6 = vcmp.gt.s32.totalorder %v635_v47, 0  ;;  %v632_v8 = vand.u32 8388607, %v625_v49  ;;  %v595_v4 = vsel %vm472_vm1, %v594_v56, %v570_v6  ;;  %vm1258_vm7 = vcmp.le.f32.partialorder %v470_v21, 0.7853982 }
  0xc3   : > { %v575_v2 = vsel %vm573_vm5, %v574_v40, %v572_v53  ;;  %v1250_v3 = vadd.s32 %v229_v33, %v220_v32  ;;  %v637_v9 = vsel %vm636_vm6, %v635_v47, 0  ;;  %v252_v10 = vadd.s32 %v251_v1, %v242_v61 }
  0xc4   : > { %v576_v34 = vclz %v575_v2  ;;  %v639_v45 = vand.u32 31, %v637_v9  ;;  %v564_v13 = vadd.s32 %v1192_v26, %v1203_v36  ;;  %v597_v15 = vsel %vm1258_vm7, 0, %v595_v4 }
  0xc5   : > { %vm255_vm8 = vc.u32 %v1250_v3, %v1248_v62  ;;  %v256_v11 = vadd.s32 1, %v252_v10  ;;  %v253_v16 = vmul.u32 %v1102_v39, %v199_v58  ;;  %v633_v17 = vor.u32 8388608, %v632_v8 }
  0xc6   : > { %v877_v44 = vadd.s32 4294967294, %v576_v34  ;;  %v640_v37 = vsub.s32 32, %v639_v45  ;;  %v1269_v5 = vshrl.u32 %v637_v9, 5  ;;  %v642_v18 = vshll.u32 %v1007_v48, %v639_v45 }
  0xc7   : > { %v257_v21 = vsel %vm255_vm8, %v256_v11, %v252_v10  ;;  %v645_v36 = vshll.u32 %v1008_v50, %v639_v45  ;;  %v648_v29 = vshll.u32 %v1009_v54, %v639_v45  ;;  %v651_v52 = vshll.u32 %v1010_v57, %v639_v45 }
  0xc8   : > { %vm878_vm9 = vcmp.lt.s32.totalorder %v877_v44, 0  ;;  %v258_v24 = vadd.s32 %v257_v21, %v253_v16  ;;  %v643_v6 = vshrl.u32 %v1008_v50, %v640_v37  ;;  %v646_v25 = vshrl.u32 %v1009_v54, %v640_v37 }
  0xc9   : > { %v579_v22 = vsel %vm878_vm9, 0, %v877_v44  ;;  %v649_v28 = vshrl.u32 %v1010_v57, %v640_v37  ;;  %v652_v30 = vshrl.u32 %v1011_v60, %v640_v37  ;;  %v655_v43 = vshrl.u32 %v1012_v63, %v640_v37 }
  0xca   : > { %v580_v27 = vsub.s32 32, %v579_v22  ;;  %v584_v26 = vsub.s32 4294967266, %v579_v22  ;;  %v259_v39 = vadd.s32 536870912, %v258_v24  ;;  %v581_v46 = vshll.u32 %v572_v53, %v579_v22  ;;  %v140_v53 = vpop.permute.xlu0 %139 }
  0xcb   : > { %v644_v35 = vor.u32 %v643_v6, %v642_v18  ;;  %v647_v41 = vor.u32 %v646_v25, %v645_v36  ;;  %v653_v55 = vor.u32 %v652_v30, %v651_v52  ;;  %v650_v59 = vor.u32 %v649_v28, %v648_v29 }
  0xcc   : > { %v582_v31 = vshrl.u32 %v564_v13, %v580_v27  ;;  %v585_v38 = vadd.s32 127, %v584_v26  ;;  %v1280_v51 = vshrl.u32 %v259_v39, 30  ;;  %v654_v47 = vshll.u32 %v1011_v60, %v639_v45 }
  0xcd   : > { %v614_v40 = vadd.s32 3, %v597_v15  ;;  %vm657_vm10 = vcmp.lt.s32.totalorder %v1269_v5, 1  ;;  %vm660_vm11 = vcmp.lt.s32.totalorder %v1269_v5, 4  ;;  %vm659_vm12 = vcmp.lt.s32.totalorder %v1269_v5, 3 }
  0xce   : > { %v583_v56 = vor.u32 %v582_v31, %v581_v46  ;;  %v586_v58 = vshll.u32 %v585_v38, 23  ;;  %v261_v32 = vshll.u32 %v1280_v51, 30  ;;  %v656_v61 = vor.u32 %v655_v43, %v654_v47 }
  0xcf   : > { %v665_v2 = vsel %vm657_vm10, %v644_v35, %v647_v41  ;;  %v666_v8 = vsel %vm660_vm11, %v653_v55, 920167782  ;;  %v1295_v10 = vshll.u32 %v633_v17, 8  ;;  %vm658_vm14 = vcmp.lt.s32.totalorder %v1269_v5, 2 }
  0xd0   : > { %v587_v33 = vor.u32 4788187, %v586_v58  ;;  %v1286_v1 = vsub.s32 %v258_v24, %v261_v32  ;;  %v590_v34 = vcvt.s32.f32 %v583_v56  ;;  %v667_v4 = vsel %vm659_vm12, %v650_v59, %v666_v8 }
  0xd1   : > { %v1301_v44 = vmul.f32 %v1079_v12, %v140_v53  ;;  %v1305_v13 = vsel %vm658_vm14, %v665_v2, %v667_v4  ;;  %v669_v15 = vsel %vm657_vm10, %v647_v41, %v650_v59  ;;  %v670_v16 = vsel %vm660_vm11, %v656_v61, 1326507024 }
  0xd2   : > { %v588_v9 = vand.u32 2147483647, %v587_v33  ;;  %vm263_vm13 = vcmp.lt.s32.totalorder %v1286_v1, 0  ;;  %v264_v45 = vsub.s32 0, %v1286_v1  ;;  %v1311_v17 = vand.u32 3, %v614_v40 }
  0xd3   : > { %v641_v18 = vshrl.u32 %v1007_v48, %v640_v37  ;;  %v671_v12 = vsel %vm659_vm12, %v653_v55, %v670_v16  ;;  %v662_v6 = vsel %vm660_vm11, %v650_v59, 2102212464  ;;  %v674_v27 = vand.u32 65535, %v1295_v10 }
  0xd4   : > { %v591_v11 = vmul.f32 %v590_v34, %v588_v9  ;;  %v265_v21 = vsel %vm263_vm13, %v264_v45, %v1286_v1  ;;  %v672_v25 = vsel %vm658_vm14, %v669_v15, %v671_v12  ;;  %v675_v26 = vshrl.u32 %v1295_v10, 16 }
  0xd5   : > { %v266_v24 = vclz %v265_v21  ;;  %v676_v36 = vand.u32 65535, %v672_v25  ;;  %v698_v28 = vand.u32 65535, %v1305_v13  ;;  %v677_v29 = vshrl.u32 %v672_v25, 16 }
  0xd6   : > { %v592_v22 = vxor.u32 2147483648, %v591_v11  ;;  %v699_v52 = vshrl.u32 %v1305_v13, 16  ;;  %v254_v46 = vadd.s32 %v1248_v62, %v1250_v3  ;;  %v284_v31 = vsub.s32 4, %v1280_v51 }
  0xd7   : > { %v871_v39 = vadd.s32 4294967294, %v266_v24  ;;  %v1335_v38 = vmul.u32 %v676_v36, %v675_v26  ;;  %v1341_v55 = vsel %vm657_vm10, %v641_v18, %v644_v35  ;;  %v679_v56 = vmul.u32 %v677_v29, %v674_v27 }
  0xd8   : > { %v593_v37 = vsel %vm472_vm1, %v592_v22, %v591_v11  ;;  %v1345_v7 = vsel %vm659_vm12, %v647_v41, %v662_v6  ;;  %v678_v59 = vmul.u32 %v676_v36, %v674_v27  ;;  %v700_v62 = vmul.u32 %v698_v28, %v674_v27 }
  0xd9   : > { %v1330_v30 = vsel %vm1258_vm7, %v1086_v19, %v593_v37  ;;  %vm872_vm15 = vcmp.lt.s32.totalorder %v871_v39, 0  ;;  %v1347_v32 = vmul.u32 %v699_v52, %v674_v27  ;;  %v681_v61 = vmul.u32 %v677_v29, %v675_v26 }
  0xda   : > { %v598_v43 = vmul.f32 %v1330_v30, %v1330_v30  ;;  %v269_v58 = vsel %vm872_vm15, 0, %v871_v39  ;;  %v682_v53 = vshll.u32 %v679_v56, 16  ;;  %v684_v2 = vshll.u32 %v1335_v38, 16 }
  0xdb   : > { %v270_v40 = vsub.s32 32, %v269_v58  ;;  %v274_v33 = vsub.s32 4294967266, %v269_v58  ;;  %v271_v9 = vshll.u32 %v1286_v1, %v269_v58  ;;  %v702_v45 = vmul.u32 %v698_v28, %v675_v26 }
  0xdc   : > { %v599_v3 = vmul.f32 -0.001358992, %v598_v43  ;;  %v606_v47 = vmul.f32 -0.00019511016, %v598_v43  ;;  %vm686_vm0 = vc.u32 %v678_v59, %v682_v53  ;;  %v688_v41 = vadd.s32 %v682_v53, %v678_v59 }
  0xdd   : > { %v272_v34 = vshrl.u32 %v254_v46, %v270_v40  ;;  %v275_v4 = vadd.s32 127, %v274_v33  ;;  %v687_v15 = vsel %vm686_vm0, 1, %v1005_v0  ;;  %v704_v16 = vshll.u32 %v1347_v32, 16 }
  0xde   : > { %v600_v35 = vadd.f32 0.041655596, %v599_v3  ;;  %v607_v8 = vadd.f32 0.008332121, %v606_v47  ;;  %vm162_vm1 = vcmp.lt.s32.totalorder %v1089_v20, 0  ;;  %v689_v12 = vadd.s32 %v687_v15, %v681_v61 }
  0xdf   : > { %v273_v21 = vor.u32 %v272_v34, %v271_v9  ;;  %v276_v18 = vshll.u32 %v275_v4, 23  ;;  %vm690_vm2 = vc.u32 %v688_v41, %v684_v2  ;;  %v683_v1 = vshrl.u32 %v679_v56, 16 }
  0xe0   : > { %v601_v11 = vmul.f32 %v600_v35, %v598_v43  ;;  %v608_v13 = vmul.f32 %v607_v8, %v598_v43  ;;  %v691_v6 = vsel %vm690_vm2, 1, %v1005_v0  ;;  %vm1357_vm3 = vcmp.le.f32.partialorder %v160_v23, 0.7853982 }
  0xe1   : > { %v277_v27 = vor.u32 4788187, %v276_v18  ;;  %v693_v36 = vadd.s32 %v691_v6, %v689_v12  ;;  %v703_v28 = vmul.u32 %v699_v52, %v675_v26  ;;  %v706_v37 = vshll.u32 %v702_v45, 16 }
  0xe2   : > { %v602_v22 = vadd.f32 -0.4999988, %v601_v11  ;;  %v609_v24 = vadd.f32 -0.16666654, %v608_v13  ;;  %vm616_vm4 = vcmp.lt.s32.totalorder %v1311_v17, 2  ;;  %vm708_vm5 = vc.u32 %v700_v62, %v704_v16 }
  0xe3   : > { %v710_v46 = vadd.s32 %v704_v16, %v700_v62  ;;  %vm613_vm6 = vweird.f32 %v1086_v19  ;;  %v278_v56 = vand.u32 2147483647, %v277_v27  ;;  %v280_v58 = vcvt.s32.f32 %v273_v21 }
  0xe4   : > { %v603_v39 = vmul.f32 %v602_v22, %v598_v43  ;;  %v610_v29 = vmul.f32 %v609_v24, %v598_v43  ;;  %v694_v59 = vadd.s32 %v693_v36, %v683_v1  ;;  %v709_v23 = vsel %vm708_vm5, 1, %v1005_v0 }
  0xe5   : > { %v711_v40 = vadd.s32 %v709_v23, %v703_v28  ;;  %vm712_vm7 = vc.u32 %v710_v46, %v706_v37  ;;  %v281_v26 = vmul.f32 %v280_v58, %v278_v56  ;;  %v685_v52 = vshrl.u32 %v1335_v38, 16 }
  0xe6   : > { %v604_v3 = vadd.f32 1.0, %v603_v39  ;;  %v611_v47 = vadd.f32 1.0, %v610_v29  ;;  %v705_v43 = vshrl.u32 %v1347_v32, 16  ;;  %v713_v62 = vsel %vm712_vm7, 1, %v1005_v0 }
  0xe7   : > { %v715_v53 = vadd.s32 %v713_v62, %v711_v40  ;;  %v1371_v2 = vadd.f32 %v1301_v44, %v1081_v14  ;;  %vm617_vm8 = vcmp.eq.s32.totalorder %v1311_v17, 0  ;;  %vm620_vm9 = vcmp.eq.s32.totalorder %v1311_v17, 2 }
  0xe8   : > { %v612_v33 = vmul.f32 %v611_v47, %v1330_v30  ;;  %v621_v61 = vxor.u32 2147483648, %v604_v3  ;;  %v282_v35 = vxor.u32 2147483648, %v281_v26  ;;  %v1377_v38 = vadd.s32 %v694_v59, %v685_v52 }
  0xe9   : > { %v285_v30 = vsel %vm162_vm1, %v284_v31, %v1280_v51  ;;  %v707_v8 = vshrl.u32 %v702_v45, 16  ;;  %v716_v9 = vadd.s32 %v715_v53, %v705_v43  ;;  %v664_v44 = vsel %vm658_vm14, %v1341_v55, %v1345_v7 }
  0xea   : > { %v618_v32 = vxor.u32 2147483648, %v612_v33  ;;  %v283_v14 = vsel %vm162_vm1, %v282_v35, %v281_v26  ;;  %v1390_v34 = vadd.s32 %v710_v46, %v706_v37  ;;  %v318_v4 = vand.u32 2139095040, %v1371_v2 }
  0xeb   : > { %v622_v11 = vsel %vm620_vm9, %v621_v61, %v612_v33  ;;  %v286_v51 = vsel %vm1357_vm3, %v1089_v20, %v283_v14  ;;  %v717_v31 = vadd.s32 %v716_v9, %v707_v8  ;;  %v287_v7 = vsel %vm1357_vm3, 0, %v285_v30 }
  0xec   : > { %v619_v41 = vsel %vm617_vm8, %v604_v3, %v618_v32  ;;  %v288_v13 = vmul.f32 %v286_v51, %v286_v51  ;;  %vm720_vm10 = vc.u32 %v1377_v38, %v1390_v34  ;;  %v319_v5 = vshrl.u32 %v318_v4, 23 }
  0xed   : > { %v623_v45 = vsel %vm616_vm4, %v619_v41, %v622_v11  ;;  %v721_v15 = vadd.s32 1, %v717_v31  ;;  %v718_v17 = vmul.u32 %v1295_v10, %v664_v44  ;;  %v304_v19 = vadd.s32 3, %v287_v7 }
  0xee   : > { %v624_v55 = vsel %vm613_vm6, nan, %v623_v45  ;;  %v289_v16 = vmul.f32 -0.001358992, %v288_v13  ;;  %v296_v21 = vmul.f32 -0.00019511016, %v288_v13  ;;  %v873_v18 = vadd.s32 4294967169, %v319_v5 }
  0xef   : > { %782 = vst [vmem:[%s1404_s25 + $0x10] sm:$0xff] %v624_v55  ;;  %v722_v12 = vsel %vm720_vm10, %v721_v15, %v717_v31  ;;  %v315_v27 = vand.u32 2147483647, %v1371_v2  ;;  %v305_v56 = vand.u32 3, %v304_v19  ;;  %vm303_vm12 = vweird.f32 %v1089_v20 }
  0xf0   : > { %v290_v22 = vadd.f32 0.041655596, %v289_v16  ;;  %v297_v24 = vadd.f32 0.008332121, %v296_v21  ;;  %v723_v1 = vadd.s32 %v722_v12, %v718_v17  ;;  %v325_v6 = vadd.s32 1, %v873_v18 }
  0xf1   : > { %v322_v10 = vand.u32 8388607, %v315_v27  ;;  %vm306_vm13 = vcmp.lt.s32.totalorder %v305_v56, 2  ;;  %vm307_vm14 = vcmp.eq.s32.totalorder %v305_v56, 0  ;;  %vm310_vm15 = vcmp.eq.s32.totalorder %v305_v56, 2 }
  0xf2   : > { %v291_v25 = vmul.f32 %v290_v22, %v288_v13  ;;  %v298_v36 = vmul.f32 %v297_v24, %v288_v13  ;;  %v724_v28 = vadd.s32 536870912, %v723_v1  ;;  %vm326_vm11 = vcmp.gt.s32.totalorder %v325_v6, 0 }
  0xf3   : > { %v327_v37 = vsel %vm326_vm11, %v325_v6, 0  ;;  %v323_v43 = vor.u32 8388608, %v322_v10  ;;  %vm1478_vm6 = vcmp.le.f32.partialorder %v625_v49, 0.7853982  ;;  %vm627_vm8 = vcmp.lt.s32.totalorder %v1105_v42, 0 }
  0xf4   : > { %v292_v39 = vadd.f32 -0.4999988, %v291_v25  ;;  %v299_v29 = vadd.f32 -0.16666654, %v298_v36  ;;  %v1409_v46 = vshrl.u32 %v724_v28, 30  ;;  %v329_v58 = vand.u32 31, %v327_v37 }
  0xf5   : > { %v1417_v53 = vshrl.u32 %v327_v37, 5 }
  0xf6   : > { %v293_v59 = vmul.f32 %v292_v39, %v288_v13  ;;  %v300_v23 = vmul.f32 %v299_v29, %v288_v13  ;;  %v726_v3 = vshll.u32 %v1409_v46, 30  ;;  %v1414_v47 = vsub.s32 32, %v329_v58 }
  0xf7   : > { %v332_v35 = vshll.u32 %v1007_v48, %v329_v58  ;;  %v335_v14 = vshll.u32 %v1008_v50, %v329_v58  ;;  %v338_v11 = vshll.u32 %v1009_v54, %v329_v58  ;;  %v341_v45 = vshll.u32 %v1010_v57, %v329_v58 }
  0xf8   : > { %v294_v40 = vadd.f32 1.0, %v293_v59  ;;  %v301_v26 = vadd.f32 1.0, %v300_v23  ;;  %v727_v52 = vsub.s32 %v723_v1, %v726_v3  ;;  %v333_v32 = vshrl.u32 %v1008_v50, %v1414_v47 }
  0xf9   : > { %v336_v30 = vshrl.u32 %v1009_v54, %v1414_v47  ;;  %v339_v44 = vshrl.u32 %v1010_v57, %v1414_v47  ;;  %v344_v13 = vshll.u32 %v1011_v60, %v329_v58  ;;  %v345_v50 = vshrl.u32 %v1012_v63, %v1414_v47 }
  0xfa   : > { %v302_v62 = vmul.f32 %v301_v26, %v286_v51  ;;  %v311_v33 = vxor.u32 2147483648, %v294_v40  ;;  %vm728_vm0 = vcmp.lt.s32.totalorder %v727_v52, 0  ;;  %v729_v61 = vsub.s32 0, %v727_v52 }
  0xfb   : > { %v342_v51 = vshrl.u32 %v1011_v60, %v1414_v47  ;;  %v1436_v7 = vor.u32 %v333_v32, %v332_v35  ;;  %v1438_v15 = vor.u32 %v336_v30, %v335_v14  ;;  %v1442_v16 = vor.u32 %v339_v44, %v338_v11 }
  0xfc   : > { %v308_v8 = vxor.u32 2147483648, %v302_v62  ;;  %v730_v9 = vsel %vm728_vm0, %v729_v61, %v727_v52  ;;  %v312_v4 = vsel %vm310_vm15, %v311_v33, %v302_v62  ;;  %v346_v17 = vor.u32 %v345_v50, %v344_v13 }
  0xfd   : > { %v731_v41 = vclz %v730_v9  ;;  %v343_v21 = vor.u32 %v342_v51, %v341_v45  ;;  %v719_v57 = vadd.s32 %v1390_v34, %v1377_v38  ;;  %v1447_v60 = vshll.u32 %v323_v43, 8 }
  0xfe   : > { %v309_v31 = vsel %vm307_vm14, %v294_v40, %v308_v8  ;;  %vm347_vm2 = vcmp.lt.s32.totalorder %v1417_v53, 1  ;;  %vm348_vm3 = vcmp.lt.s32.totalorder %v1417_v53, 2  ;;  %vm349_vm4 = vcmp.lt.s32.totalorder %v1417_v53, 3 }
  0xff   : > { %v313_v5 = vsel %vm306_vm13, %v309_v31, %v312_v4  ;;  %v880_v55 = vadd.s32 4294967294, %v731_v41  ;;  %vm350_vm5 = vcmp.lt.s32.totalorder %v1417_v53, 4  ;;  %v355_v12 = vsel %vm347_vm2, %v1436_v7, %v1438_v15 }
 0x100   : > { %v314_v54 = vsel %vm303_vm12, nan, %v313_v5  ;;  %v356_v34 = vsel %vm350_vm5, %v343_v21, 920167782  ;;  %v359_v22 = vsel %vm347_vm2, %v1438_v15, %v1442_v16  ;;  %v360_v24 = vsel %vm350_vm5, %v346_v17, 1326507024 }
 0x101   : > { %780 = vst [vmem:[%s1404_s25] sm:$0xff] %v314_v54  ;;  %vm881_vm1 = vcmp.lt.s32.totalorder %v880_v55, 0  ;;  %v357_v19 = vsel %vm349_vm4, %v1442_v16, %v356_v34  ;;  %v361_v25 = vsel %vm349_vm4, %v343_v21, %v360_v24  ;;  %v364_v37 = vand.u32 65535, %v1447_v60 }
 0x102   : > { %v734_v63 = vsel %vm881_vm1, 0, %v880_v55  ;;  %v358_v36 = vsel %vm348_vm3, %v355_v12, %v357_v19  ;;  %v362_v28 = vsel %vm348_vm3, %v359_v22, %v361_v25  ;;  %v365_v58 = vshrl.u32 %v1447_v60, 16 }
 0x103   : > { %v735_v20 = vsub.s32 32, %v734_v63  ;;  %v739_v18 = vsub.s32 4294967266, %v734_v63  ;;  %v736_v38 = vshll.u32 %v727_v52, %v734_v63  ;;  %v366_v56 = vand.u32 65535, %v362_v28 }
 0x104   : > { %v367_v10 = vshrl.u32 %v362_v28, 16  ;;  %v388_v59 = vand.u32 65535, %v358_v36  ;;  %v389_v23 = vshrl.u32 %v358_v36, 16  ;;  %v749_v54 = vsub.s32 4, %v1409_v46 }
 0x105   : > { %v737_v1 = vshrl.u32 %v719_v57, %v735_v20  ;;  %v740_v6 = vadd.s32 127, %v739_v18  ;;  %v370_v52 = vmul.u32 %v366_v56, %v365_v58  ;;  %v368_v61 = vmul.u32 %v366_v56, %v364_v37 }
 0x106   : > { %v369_v40 = vmul.u32 %v367_v10, %v364_v37  ;;  %v391_v43 = vmul.u32 %v389_v23, %v364_v37  ;;  %v371_v32 = vmul.u32 %v367_v10, %v365_v58  ;;  %v390_v30 = vmul.u32 %v388_v59, %v364_v37 }
 0x107   : > { %v738_v39 = vor.u32 %v737_v1, %v736_v38  ;;  %v741_v29 = vshll.u32 %v740_v6, 23  ;;  %v392_v8 = vmul.u32 %v388_v59, %v365_v58  ;;  %v374_v44 = vshll.u32 %v370_v52, 16 }
 0x108   : > { %v372_v35 = vshll.u32 %v369_v40, 16  ;;  %v394_v9 = vshll.u32 %v391_v43, 16  ;;  %v393_v41 = vmul.u32 %v389_v23, %v365_v58  ;;  %v373_v21 = vshrl.u32 %v369_v40, 16 }
 0x109   : > { %v742_v3 = vor.u32 4788187, %v741_v29  ;;  %v745_v33 = vcvt.s32.f32 %v738_v39  ;;  %v396_v13 = vshll.u32 %v392_v8, 16  ;;  %v331_v63 = vshrl.u32 %v1007_v48, %v1414_v47 }
 0x10a   : > { %vm376_vm7 = vc.u32 %v368_v61, %v372_v35  ;;  %v378_v4 = vadd.s32 %v372_v35, %v368_v61  ;;  %vm398_vm9 = vc.u32 %v390_v30, %v394_v9  ;;  %v400_v50 = vadd.s32 %v394_v9, %v390_v30 }
 0x10b   : > { %v743_v62 = vand.u32 2147483647, %v742_v3  ;;  %v377_v49 = vsel %vm376_vm7, 1, %v1005_v0  ;;  %v399_v31 = vsel %vm398_vm9, 1, %v1005_v0  ;;  %v352_v20 = vsel %vm350_vm5, %v1442_v16, 2102212464 }
 0x10c   : > { %v379_v51 = vadd.s32 %v377_v49, %v371_v32  ;;  %vm380_vm10 = vc.u32 %v378_v4, %v374_v44  ;;  %v401_v5 = vadd.s32 %v399_v31, %v393_v41  ;;  %vm402_vm11 = vc.u32 %v400_v50, %v396_v13 }
 0x10d   : > { %v746_v14 = vmul.f32 %v745_v33, %v743_v62  ;;  %v381_v45 = vsel %vm380_vm10, 1, %v1005_v0  ;;  %v375_v12 = vshrl.u32 %v370_v52, 16  ;;  %v403_v34 = vsel %vm402_vm11, 1, %v1005_v0 }
 0x10e   : > { %v383_v17 = vadd.s32 %v381_v45, %v379_v51  ;;  %v351_v22 = vsel %vm347_vm2, %v331_v63, %v1436_v7  ;;  %v395_v24 = vshrl.u32 %v391_v43, 16  ;;  %v405_v1 = vadd.s32 %v403_v34, %v401_v5 }
 0x10f   : > { %v747_v11 = vxor.u32 2147483648, %v746_v14  ;;  %v353_v48 = vsel %vm349_vm4, %v1438_v15, %v352_v20  ;;  %v750_v16 = vsel %vm627_vm8, %v749_v54, %v1409_v46  ;;  %v397_v25 = vshrl.u32 %v392_v8, 16 }
 0x110   : > { %v384_v38 = vadd.s32 %v383_v17, %v373_v21  ;;  %v406_v36 = vadd.s32 %v405_v1, %v395_v24  ;;  %v404_v37 = vadd.s32 %v400_v50, %v396_v13  ;;  %v354_v7 = vsel %vm348_vm3, %v351_v22, %v353_v48 }
 0x111   : > { %v748_v55 = vsel %vm627_vm8, %v747_v11, %v746_v14  ;;  %v752_v29 = vsel %vm1478_vm6, 0, %v750_v16  ;;  %v408_v46 = vmul.u32 %v1447_v60, %v354_v7  ;;  %vm768_vm0 = vweird.f32 %v1105_v42 }
 0x112   : > { %v751_v57 = vsel %vm1478_vm6, %v1105_v42, %v748_v55  ;;  %v385_v47 = vadd.s32 %v384_v38, %v375_v12  ;;  %v407_v39 = vadd.s32 %v406_v36, %v397_v25  ;;  %v769_v23 = vadd.s32 3, %v752_v29 }
 0x113   : > { %v753_v18 = vmul.f32 %v751_v57, %v751_v57  ;;  %vm317_vm3 = vcmp.lt.s32.totalorder %v1371_v2, 0  ;;  %vm316_vm4 = vcmp.le.f32.partialorder %v315_v27, 0.7853982  ;;  %vm458_vm8 = vweird.f32 %v1371_v2 }
 0x114   : > { %vm410_vm12 = vc.u32 %v385_v47, %v404_v37  ;;  %v411_v15 = vadd.s32 1, %v407_v39  ;;  %v770_v61 = vand.u32 3, %v769_v23  ;;  %v409_v45 = vadd.s32 %v404_v37, %v385_v47 }
 0x115   : > { %v754_v6 = vmul.f32 -0.001358992, %v753_v18  ;;  %v761_v19 = vmul.f32 -0.00019511016, %v753_v18 }
 0x116   : > { %v412_v3 = vsel %vm410_vm12, %v411_v15, %v407_v39  ;;  %vm772_vm13 = vcmp.eq.s32.totalorder %v770_v61, 0  ;;  %vm775_vm14 = vcmp.eq.s32.totalorder %v770_v61, 2  ;;  %vm771_vm15 = vcmp.lt.s32.totalorder %v770_v61, 2 }
 0x117   : > { %v755_v0 = vadd.f32 0.041655596, %v754_v6  ;;  %v762_v28 = vadd.f32 0.008332121, %v761_v19  ;;  %v413_v43 = vadd.s32 %v412_v3, %v408_v46 }
 0x119   : > { %v756_v56 = vmul.f32 %v755_v0, %v753_v18  ;;  %v763_v10 = vmul.f32 %v762_v28, %v753_v18  ;;  %v414_v33 = vadd.s32 536870912, %v413_v43 }
 0x11b   : > { %v757_v58 = vadd.f32 -0.4999988, %v756_v56  ;;  %v764_v59 = vadd.f32 -0.16666654, %v763_v10  ;;  %v415_v32 = vshrl.u32 %v414_v33, 30 }
 0x11d   : > { %v758_v40 = vmul.f32 %v757_v58, %v753_v18  ;;  %v765_v52 = vmul.f32 %v764_v59, %v753_v18  ;;  %v416_v8 = vshll.u32 %v415_v32, 30  ;;  %v439_v38 = vsub.s32 4, %v415_v32 }
 0x11f   : > { %v759_v62 = vadd.f32 1.0, %v758_v40  ;;  %v766_v53 = vadd.f32 1.0, %v765_v52  ;;  %v417_v14 = vsub.s32 %v413_v43, %v416_v8  ;;  %v440_v6 = vsel %vm317_vm3, %v439_v38, %v415_v32 }
 0x120   : > { %v442_v47 = vsel %vm316_vm4, 0, %v440_v6 }
 0x121   : > { %v767_v35 = vmul.f32 %v766_v53, %v751_v57  ;;  %v776_v26 = vxor.u32 2147483648, %v759_v62  ;;  %vm418_vm1 = vcmp.lt.s32.totalorder %v417_v14, 0  ;;  %v419_v49 = vsub.s32 0, %v417_v14 }
 0x122   : > { %v459_v28 = vadd.s32 3, %v442_v47 }
 0x123   : > { %v773_v30 = vxor.u32 2147483648, %v767_v35  ;;  %v777_v60 = vsel %vm775_vm14, %v776_v26, %v767_v35  ;;  %v420_v41 = vsel %vm418_vm1, %v419_v49, %v417_v14 }
 0x124   : > { %v421_v11 = vclz %v420_v41  ;;  %v460_v29 = vand.u32 3, %v459_v28 }
 0x125   : > { %v774_v9 = vsel %vm772_vm13, %v759_v62, %v773_v30 }
 0x126   : > { %v778_v44 = vsel %vm771_vm15, %v774_v9, %v777_v60  ;;  %v874_v51 = vadd.s32 4294967294, %v421_v11  ;;  %vm462_vm5 = vcmp.eq.s32.totalorder %v460_v29, 0  ;;  %vm465_vm6 = vcmp.eq.s32.totalorder %v460_v29, 2 }
 0x127   : > { %v779_v4 = vsel %vm768_vm0, nan, %v778_v44  ;;  %vm461_vm7 = vcmp.lt.s32.totalorder %v460_v29, 2 }
 0x128   : > { %783 = vst [vmem:[%s1404_s25 + $0x18] sm:$0xff] %v779_v4  ;;  %vm875_vm2 = vcmp.lt.s32.totalorder %v874_v51, 0 }
 0x129   : > { %v424_v31 = vsel %vm875_vm2, 0, %v874_v51 }
 0x12a   : > { %v425_v13 = vsub.s32 32, %v424_v31  ;;  %v429_v50 = vsub.s32 4294967266, %v424_v31  ;;  %v426_v5 = vshll.u32 %v417_v14, %v424_v31 }
 0x12c   : > { %v427_v55 = vshrl.u32 %v409_v45, %v425_v13  ;;  %v430_v54 = vadd.s32 127, %v429_v50 }
 0x12e   : > { %v428_v21 = vor.u32 %v427_v55, %v426_v5  ;;  %v431_v17 = vshll.u32 %v430_v54, 23 }
 0x130   : > { %v432_v57 = vor.u32 4788187, %v431_v17  ;;  %v435_v63 = vcvt.s32.f32 %v428_v21 }
 0x132   : > { %v433_v42 = vand.u32 2147483647, %v432_v57 }
 0x134   : > { %v436_v20 = vmul.f32 %v435_v63, %v433_v42 }
 0x136   : > { %v437_v18 = vxor.u32 2147483648, %v436_v20 }
 0x138   : > { %v438_v12 = vsel %vm317_vm3, %v437_v18, %v436_v20 }
 0x139   : > { %v441_v34 = vsel %vm316_vm4, %v1371_v2, %v438_v12 }
 0x13a   : > { %v443_v22 = vmul.f32 %v441_v34, %v441_v34 }
 0x13c   : > { %v444_v24 = vmul.f32 -0.001358992, %v443_v22  ;;  %v451_v1 = vmul.f32 -0.00019511016, %v443_v22 }
 0x13e   : > { %v445_v19 = vadd.f32 0.041655596, %v444_v24  ;;  %v452_v48 = vadd.f32 0.008332121, %v451_v1 }
 0x140   : > { %v446_v16 = vmul.f32 %v445_v19, %v443_v22  ;;  %v453_v25 = vmul.f32 %v452_v48, %v443_v22 }
 0x142   : > { %v447_v36 = vadd.f32 -0.4999988, %v446_v16  ;;  %v454_v0 = vadd.f32 -0.16666654, %v453_v25 }
 0x144   : > { %v448_v27 = vmul.f32 %v447_v36, %v443_v22  ;;  %v455_v37 = vmul.f32 %v454_v0, %v443_v22 }
 0x146   : > { %v449_v7 = vadd.f32 1.0, %v448_v27  ;;  %v456_v39 = vadd.f32 1.0, %v455_v37 }
 0x148   : > { %v457_v56 = vmul.f32 %v456_v39, %v441_v34  ;;  %v466_v10 = vxor.u32 2147483648, %v449_v7 }
 0x14a   : > { %v463_v15 = vxor.u32 2147483648, %v457_v56  ;;  %v467_v59 = vsel %vm465_vm6, %v466_v10, %v457_v56 }
 0x14c   : > { %v464_v58 = vsel %vm462_vm5, %v449_v7, %v463_v15 }
 0x14d   : > { %v468_v46 = vsel %vm461_vm7, %v464_v58, %v467_v59 }
 0x14e   : > { %v469_v23 = vsel %vm458_vm8, nan, %v468_v46 }
 0x14f   : > { %781 = vst [vmem:[%s1404_s25 + $0x8] sm:$0xff] %v469_v23 }
 0x150   : > { %968 = shalt.err (!%p965_p3)
}
 0x151   : > { %s1013_s19 = smov 128   ;;  %s1014_s20 = smov 8  }
 0x152   : > { %888 = dma.vmem_to_hbm [thread:$0]  (%p1063_p5), %s798_s30, 512, %s800_s2, %s785_s3, %s1013_s19, %s1013_s19, %s1014_s20  }
 0x153 PF: > { %p894_p4 = scmp.ge.s32.totalorder %s1003_s9, 2  ;;  %s814_s21 = sand.u32 1, %s991_s6  }
 0x154   : > { %s815_s22 = scalar_lea.sflag [#allocation3], %s814_s21 }
 0x155   : > { %p891_p7 = pnand %p894_p4, %p1067_p6 }
 0x157   : > { %p892_p8 = pneg %p891_p7 }
 0x159   : > { %986 = dma.done.wait (%p892_p8), %s815_s22, 512  }
 0x15a   : > { %988 = vsyncadd (%p892_p8), %s815_s22, 4294966784  ;;  %p11_p9 = scmp.ge.s32.totalorder %s1050_s12, 4   ;;  %s1564_s6 = smov %s995_s7 }
 0x15b   : > { %s1565_s7 = smov %s999_s8  ;;  %s1566_s8 = smov %s1061_s15 }
 0x15c   : > { %s1567_s9 = smov %s1050_s12  ;;  %13 = sbr.rel (!%p11_p9) target bundleno = 3 (0x3), region = 59 }
 0x161   :  { %821 = vsyncpa [#allocation3], 1 }
 0x162   :  { %823 = vsyncpa [#allocation3 + $0x1], 1 }

</bundles_post_ra>
